<compile_context>
chip_gen: v7x
topology: tpu7x:2x2x1
jax: 0.10.0
libtpu: 0.0.40
codegen_flags: <defaults>
</compile_context>

<pallas_src>
import functools

import jax
import jax.numpy as jnp
from jax.experimental import pallas as pl
from jax.experimental.pallas import tpu as pltpu


def _round_up(n, m):
    return ((n + m - 1) // m) * m


# ---------------------------------------------------------------------------
# Kernel 1: batched linear projection  y = x @ W + b  (MXU), optionally
# emitting the result tile transposed so downstream kernels get (B, Hp, L).
# ---------------------------------------------------------------------------
def _linear_kernel(x_ref, w_ref, b_ref, y_ref, *, transpose_out):
    y = (jnp.dot(x_ref[0], w_ref[...], preferred_element_type=jnp.float32)
         + b_ref[...])
    y_ref[0] = y.T if transpose_out else y


def _linear(x, w, b, *, transpose_out):
    """x: (B, Mp, Hp) f32, w: (Hp, Hp) f32 (pre-transposed), b: (1, Hp) f32.
    Returns (B, Hp, Mp) f32 if transpose_out else (B, Mp, Hp) f32."""
    B, Mp, Hp = x.shape
    # tm capped at 256 (v5e scoped-VMEM headroom); tiny Mp (entity path) taken whole.
    if Mp % 128 == 0:
        tm = 256 if Mp % 256 == 0 else 128
    else:
        tm = Mp
    if transpose_out:
        out_shape = jax.ShapeDtypeStruct((B, Hp, Mp), jnp.float32)
        out_spec = pl.BlockSpec((1, Hp, tm), lambda bi, i: (bi, 0, i))
    else:
        out_shape = jax.ShapeDtypeStruct((B, Mp, Hp), jnp.float32)
        out_spec = pl.BlockSpec((1, tm, Hp), lambda bi, i: (bi, i, 0))
    return pl.pallas_call(
        functools.partial(_linear_kernel, transpose_out=transpose_out),
        out_shape=out_shape,
        grid_spec=pltpu.PrefetchScalarGridSpec(
            num_scalar_prefetch=0,
            grid=(B, Mp // tm),
            in_specs=[
                pl.BlockSpec((1, tm, Hp), lambda bi, i: (bi, i, 0)),
                pl.BlockSpec((Hp, Hp), lambda bi, i: (0, 0)),
                pl.BlockSpec((1, Hp), lambda bi, i: (0, 0)),
            ],
            out_specs=out_spec,
        ),
        compiler_params=pltpu.CompilerParams(
            dimension_semantics=("parallel", "parallel")),
    )(x, w, b)


# ---------------------------------------------------------------------------
# Kernel 2: pairwise boundary scores + mask + sigmoid
# ---------------------------------------------------------------------------
def _pairwise_kernel(flags_ref, entT_ref, tokT_ref, wp_ref, mask_ref, bp_ref,
                     cls_ref, p_ref, *, h_chunks):
    # flags_ref : SMEM (B, nLt) int32 scalar-prefetch; 1 = tile has a valid token
    # entT_ref  : (1, Hp, Lep)  entity projection, transposed (h on sublanes)
    # tokT_ref  : (1, Hp, tLt)  token projection, transposed
    # wp_ref    : (1, Hp)       boundary_predictor weight
    # mask_ref  : (1, 1, tLt)   int32, 1 = valid token position
    # bp_ref    : SMEM (1, 1)   boundary_predictor bias (scalar)
    # cls_ref/p_ref : (1, Lep, tLt)
    b = pl.program_id(0)
    t = pl.program_id(1)
    lep = entT_ref.shape[2]
    tlt = tokT_ref.shape[2]
    neg = jnp.float32(-10000.0)

    @pl.when(flags_ref[b, t] != 0)
    def _compute():
        bp = bp_ref[0, 0]
        valid = mask_ref[0] != 0                               # (1, tLt)
        for e in range(lep):                                   # Lep is small & static
            acc = jnp.zeros((1, tlt), dtype=jnp.float32)       # tiny accumulator
            for h0, hw in h_chunks:                            # static, only real-H chunks
                tok_c = tokT_ref[0, h0:h0 + hw, :]             # (hw, tLt)
                ent_c = entT_ref[0, h0:h0 + hw, e:e + 1]       # (hw, 1)
                r = jnp.maximum(tok_c + ent_c, 0.0)            # VPU: 2 ops/elem
                wp_c = wp_ref[:, h0:h0 + hw]                   # (1, hw)
                acc = acc + jnp.dot(wp_c, r,                   # MXU reduction over h
                                    preferred_element_type=jnp.float32)
            row = jnp.where(valid, acc + bp, neg)              # (1, tLt)
            cls_ref[0, e:e + 1, :] = row
            p_ref[0, e:e + 1, :] = jax.nn.sigmoid(row)

    @pl.when(flags_ref[b, t] == 0)
    def _all_masked():
        # Every token column in this tile is invalid/padded: write constants.
        cls_ref[...] = jnp.full(cls_ref.shape, neg, jnp.float32)
        p_ref[...] = jnp.zeros(p_ref.shape, jnp.float32)


# ---------------------------------------------------------------------------
# Wrapper
# ---------------------------------------------------------------------------
def entity_boundary_predictor(token_emb, entity_emb, token_mask,
                              wt_t, bt, we_t, be, wp, bp):
    """token_emb (B,Lt,H), entity_emb (B,Le,H), token_mask (B,Lt) bool (True=valid).
    wt_t/we_t: transposed (H,H) Linear weights; bt/be: (H,); wp: (H,); bp: scalar.
    Returns (cls, p), each (B, Le, Lt) float32."""
    B, Lt, H = token_emb.shape
    _, Le, _ = entity_emb.shape
    f32 = jnp.float32

    Hp = _round_up(H, 128)      # lane-dense MXU K dim
    Ltp = _round_up(Lt, 128)    # lane-dense output last dim
    Lep = _round_up(Le, 8)      # sublane-aligned output rows
    # TODO(synk): tile the entity axis in the pairwise grid if Le gets large
    # (hundreds); it is kept whole here since the per-entity loop is static.

    # --- zero-pad inputs & params ---
    tok_p = jnp.zeros((B, Ltp, Hp), f32).at[:, :Lt, :H].set(token_emb.astype(f32))
    ent_p = jnp.zeros((B, Lep, Hp), f32).at[:, :Le, :H].set(entity_emb.astype(f32))
    wt_p = jnp.zeros((Hp, Hp), f32).at[:H, :H].set(wt_t)
    we_p = jnp.zeros((Hp, Hp), f32).at[:H, :H].set(we_t)
    bt_p = jnp.zeros((1, Hp), f32).at[0, :H].set(bt)
    be_p = jnp.zeros((1, Hp), f32).at[0, :H].set(be)
    wp_p = jnp.zeros((1, Hp), f32).at[0, :H].set(wp)
    bp_p = jnp.reshape(bp.astype(f32), (1, 1))
    mask_p = jnp.zeros((B, 1, Ltp), jnp.int32).at[:, 0, :Lt].set(
        token_mask.astype(jnp.int32))

    # --- 1) projections on the MXU; token path emitted already transposed ---
    tok_projT = _linear(tok_p, wt_p, bt_p, transpose_out=True)    # (B, Hp, Ltp)
    ent_proj = _linear(ent_p, we_p, be_p, transpose_out=False)    # (B, Lep, Hp)
    ent_projT = jnp.swapaxes(ent_proj, 1, 2)                      # tiny tensor

    # --- 2) pairwise kernel, grid tiled over (batch, token tiles) ---
    tLt = 128                       # keeps relu chunk <= 16 f32 vregs, v7x-safe VMEM
    nLt = Ltp // tLt

    # per-(b, token-tile) "any valid token" flag (scalar prefetch) to skip
    # fully-masked / fully-padded tiles.
    tile_any = mask_p[:, 0, :].reshape(B, nLt, tLt).max(axis=-1).astype(jnp.int32)

    # only real-H chunks (rounded to 8); padded h columns contribute 0 and are skipped.
    h8 = _round_up(H, 8)
    n_hc = (h8 + 127) // 128
    h_chunks = tuple((c * 128, min(128, h8 - c * 128)) for c in range(n_hc))

    out_shape = (jax.ShapeDtypeStruct((B, Lep, Ltp), f32),
                 jax.ShapeDtypeStruct((B, Lep, Ltp), f32))

    in_specs = [
        pl.BlockSpec((1, Hp, Lep), lambda b, t, flags: (b, 0, 0)),   # entity proj^T (resident per b)
        pl.BlockSpec((1, Hp, tLt), lambda b, t, flags: (b, 0, t)),   # token proj^T (streamed once)
        pl.BlockSpec((1, Hp),      lambda b, t, flags: (0, 0)),      # wp
        pl.BlockSpec((1, 1, tLt),  lambda b, t, flags: (b, 0, t)),   # token mask
        pl.BlockSpec(memory_space=pltpu.MemorySpace.SMEM),           # bp scalar
    ]
    out_specs = (pl.BlockSpec((1, Lep, tLt), lambda b, t, flags: (b, 0, t)),
                 pl.BlockSpec((1, Lep, tLt), lambda b, t, flags: (b, 0, t)))

    cls_pad, p_pad = pl.pallas_call(
        functools.partial(_pairwise_kernel, h_chunks=h_chunks),
        out_shape=out_shape,
        grid_spec=pltpu.PrefetchScalarGridSpec(
            num_scalar_prefetch=1,
            grid=(B, nLt),
            in_specs=in_specs,
            out_specs=out_specs),
        compiler_params=pltpu.CompilerParams(
            dimension_semantics=("parallel", "parallel")),
    )(tile_any, ent_projT, tok_projT, wp_p, mask_p, bp_p)

    return cls_pad[:, :Le, :Lt], p_pad[:, :Le, :Lt]


# ---------------------------------------------------------------------------
# Pure-JAX reference
# ---------------------------------------------------------------------------
def reference(token_emb, entity_emb, token_mask, wt_t, bt, we_t, be, wp, bp):
    t = token_emb @ wt_t + bt                            # (B, Lt, H)
    e = entity_emb @ we_t + be                           # (B, Le, H)
    mm = t[:, None, :, :] + e[:, :, None, :]             # (B, Le, Lt, H)
    cls = jnp.maximum(mm, 0.0) @ wp + bp                 # (B, Le, Lt)
    cls = jnp.where(token_mask[:, None, :], cls, -10000.0)
    return cls, jax.nn.sigmoid(cls)


if __name__ == "__main__":
    B, Lt, Le, H = 2, 8, 8, 32

    key = jax.random.PRNGKey(0)
    ks = jax.random.split(key, 9)

    token_emb = jax.random.normal(ks[0], (B, Lt, H), dtype=jnp.float32)
    entity_emb = jax.random.normal(ks[1], (B, Le, H), dtype=jnp.float32)
    token_mask = jax.random.bernoulli(ks[2], p=0.7, shape=(B, Lt))   # True = valid

    # PyTorch nn.Linear stores (out, in); weights here are pre-transposed.
    wt_t = 0.05 * jax.random.normal(ks[3], (H, H), dtype=jnp.float32)
    bt = 0.05 * jax.random.normal(ks[4], (H,), dtype=jnp.float32)
    we_t = 0.05 * jax.random.normal(ks[5], (H, H), dtype=jnp.float32)
    be = 0.05 * jax.random.normal(ks[6], (H,), dtype=jnp.float32)
    wp = 0.05 * jax.random.normal(ks[7], (H,), dtype=jnp.float32)    # boundary_predictor weight
    bp = 0.05 * jax.random.normal(ks[8], (), dtype=jnp.float32)      # boundary_predictor bias

    cls, p = entity_boundary_predictor(token_emb, entity_emb, token_mask,
                                       wt_t, bt, we_t, be, wp, bp)
    jax.block_until_ready((cls, p))

    cls_ref, p_ref = reference(token_emb, entity_emb, token_mask,
                               wt_t, bt, we_t, be, wp, bp)
    assert jnp.allclose(cls, cls_ref, atol=1e-3, rtol=1e-3), (
        float(jnp.max(jnp.abs(cls - cls_ref))))
    assert jnp.allclose(p, p_ref, atol=1e-3, rtol=1e-3)

    print("KERNEL_OK")
</pallas_src>

<mosaic_0001>
module attributes {stable_mosaic.version = 11 : i64} {
  func.func @_linear_kernel(%arg0: i32, %arg1: i32, %arg2: memref<1x128x128xf32, #tpu.memory_space<vmem>>, %arg3: memref<128x128xf32, #tpu.memory_space<vmem>>, %arg4: memref<1x128xf32, #tpu.memory_space<vmem>>, %arg5: memref<1x128x128xf32, #tpu.memory_space<vmem>>) attributes {dimension_semantics = [#tpu.dimension_semantics<parallel>, #tpu.dimension_semantics<parallel>], iteration_bounds = array<i64: 2, 1>, scalar_prefetch = 0 : i64, scratch_operands = 0 : i64, tpu.core_type = #tpu.core_type<tc>, window_params = [{transform_indices = @transform_0, window_bounds = array<i64: 1, 128, 128>}, {pipeline_mode = #tpu.pipeline_mode<synchronous>, transform_indices = @transform_1, window_bounds = array<i64: 128, 128>}, {pipeline_mode = #tpu.pipeline_mode<synchronous>, transform_indices = @transform_2, window_bounds = array<i64: 1, 128>}, {transform_indices = @transform_3, window_bounds = array<i64: 1, 128, 128>}]} {
    %c0 = arith.constant 0 : index
    %c0_0 = arith.constant 0 : index
    %c0_1 = arith.constant 0 : index
    %0 = vector.load %arg2[%c0, %c0_0, %c0_1] : memref<1x128x128xf32, #tpu.memory_space<vmem>>, vector<1x128x128xf32>
    %1 = vector.shape_cast %0 : vector<1x128x128xf32> to vector<128x128xf32>
    %c0_2 = arith.constant 0 : index
    %c0_3 = arith.constant 0 : index
    %2 = vector.load %arg3[%c0_2, %c0_3] : memref<128x128xf32, #tpu.memory_space<vmem>>, vector<128x128xf32>
    %cst = arith.constant dense<0.000000e+00> : vector<128x128xf32>
    %3 = tpu.matmul %1, %2, %cst {dimension_numbers = #tpu.dot_dimension_numbers<[1], [0], [0], [1], [0, 0, 1, 1], [], []>} : vector<128x128xf32>, vector<128x128xf32>, vector<128x128xf32> -> vector<128x128xf32>
    %c0_4 = arith.constant 0 : index
    %c0_5 = arith.constant 0 : index
    %4 = vector.load %arg4[%c0_4, %c0_5] : memref<1x128xf32, #tpu.memory_space<vmem>>, vector<1x128xf32>
    %5 = vector.broadcast %4 : vector<1x128xf32> to vector<128x128xf32>
    %6 = arith.addf %3, %5 : vector<128x128xf32>
    %7 = tpu.transpose %6, [1, 0] : vector<128x128xf32> -> vector<128x128xf32>
    %c0_6 = arith.constant 0 : index
    %c0_7 = arith.constant 0 : index
    %c0_8 = arith.constant 0 : index
    %8 = vector.load %arg5[%c0_6, %c0_7, %c0_8] : memref<1x128x128xf32, #tpu.memory_space<vmem>>, vector<1x128x128xf32>
    %9 = vector.shape_cast %8 : vector<1x128x128xf32> to vector<128x128xf32>
    %10 = vector.shape_cast %7 : vector<128x128xf32> to vector<1x128x128xf32>
    tpu.vector_store %arg5[%c0_6, %c0_7, %c0_8], %10 {strides = array<i32>} : memref<1x128x128xf32, #tpu.memory_space<vmem>>, vector<1x128x128xf32>,
    return
  }
  func.func @transform_0(%arg0: i32, %arg1: i32) -> (i32, i32, i32) {
    %c0_i32 = arith.constant 0 : i32
    %c0_i32_0 = arith.constant 0 : i32
    return %arg0, %arg1, %c0_i32 : i32, i32, i32
  }
  func.func @transform_1(%arg0: i32, %arg1: i32) -> (i32, i32) {
    %c0_i32 = arith.constant 0 : i32
    %c0_i32_0 = arith.constant 0 : i32
    %c0_i32_1 = arith.constant 0 : i32
    return %c0_i32, %c0_i32_0 : i32, i32
  }
  func.func @transform_2(%arg0: i32, %arg1: i32) -> (i32, i32) {
    %c0_i32 = arith.constant 0 : i32
    %c0_i32_0 = arith.constant 0 : i32
    %c0_i32_1 = arith.constant 0 : i32
    return %c0_i32, %c0_i32_0 : i32, i32
  }
  func.func @transform_3(%arg0: i32, %arg1: i32) -> (i32, i32, i32) {
    %c0_i32 = arith.constant 0 : i32
    %c0_i32_0 = arith.constant 0 : i32
    return %arg0, %c0_i32, %arg1 : i32, i32, i32
  }
}

</mosaic_0001>

<bundles_post_ra>
// kernel: tpu_custom_call.1
= control target key start
LH: loop header
LB: loop body
LE: loop exit
PB: predicated region body
PF: predicated region fallthrough
CT: control target
= control target key end

     0   :  { %8 = vsyncpa [#allocation3], 0  ;;  %s1241_s0 = inlined_call_operand.hbm [shape: f32[2,128,128], index: 0, kind: input, shape index: {}]   ;;  %s1242_s1 = inlined_call_operand.hbm [shape: f32[128,128], index: 1, kind: input, shape index: {}]   ;;  %s1243_s2 = inlined_call_operand.vmem [shape: f32[1,128], index: 2, kind: input, shape index: {}]   ;;  %s1244_s3 = inlined_call_operand.hbm [shape: f32[2,128,128], index: 3, kind: output, shape index: {}]  }
   0x1   :  { %10 = vsyncpa [#allocation3 + $0x1], 0 }
   0x2   :  { %11 = vsyncpa [#allocation6], 0 }
   0x3   :  { %12 = vsyncpa [#allocation4], 0 }
   0x4   :  { %14 = vsyncpa [#allocation4 + $0x1], 0  ;;  %s972_s12 = smov 0   ;;  %s974_s13 = smov 0  }
   0x5   :  { %s976_s14 = smov 0   ;;  %s978_s15 = smov 0  }
   0x6   :  { %s980_s16 = smov 0   ;;  %s982_s17 = smov 0  }
   0x7 LB: > { %s566_s18 = sadd.s32 4294967295, %s943_s17   ;;  %s567_s19 = sadd.s32 4294967294, %s943_s17   ;;  %s943_s17 = sphi %s982_s17, %s20_s17   ;;  %s939_s16 = sphi %s980_s16, %s1268_s16   ;;  %s935_s15 = sphi %s978_s15, %s1267_s15   ;;  %s931_s14 = sphi %s976_s14, %s1266_s14   ;;  %s927_s13 = sphi %s974_s13, %s1265_s13   ;;  %s923_s12 = sphi %s972_s12, %s1264_s12  }
   0x8   : > { %p54_p0 = scmp.ne.s32.totalorder %s927_s13, %s923_s12  ;;  %p1006_p1 = scmp.eq.s32.totalorder %s566_s18, 0 }
   0x9   : > { %p1010_p2 = scmp.eq.s32.totalorder %s566_s18, 1  ;;  %p128_p3 = scmp.eq.s32.totalorder %s567_s19, 1 }
   0xa   : > { %s1249_s20 = scalar_select %p1006_p1, 1, 0 }
   0xb   : > { %s1250_s21 = scalar_select %p1010_p2, 1, 0 }
   0xc   : > { %p1016_p4 = por %p1006_p1, %p54_p0  ;;  %p568_p5 = scmp.ge.s32.totalorder %s943_s17, 1 }
   0xd   : > { %p1021_p6 = por %p128_p3, %p54_p0  ;;  %p135_p7 = scmp.lt.s32.totalorder %s943_s17, 3 }
   0xe   : > { %s1251_s22 = scalar_select %p1016_p4, 1, 0 }
   0xf   : > { %s1252_s23 = scalar_select %p1021_p6, 1, 0 }
  0x10   : > { %p1026_p8 = pnand %p568_p5, %p135_p7  ;;  %s945_s25 = smov [#allocation5]  }
  0x11   : > { %s147_s26 = sshll.u32 %s945_s25, 4  ;;  %s32_s28 = sadd.s32 1, %s939_s16  ;;  %s148_s26 = int_to_ptr.vmem [resolvable:$true] %s147_s26 }
  0x12   : > { %s1253_s24 = scalar_select %p1026_p8, 1, 0 }
  0x13   : > { %p730_p9 = pneg %p1026_p8  ;;  %s799_s4 = scalar_lea.hbm %s1242_s1, 2048 }
  0x14   : > { %p800_p12 = scmp.ne.s32.totalorder %s1242_s1, %s799_s4  ;;  %p806_p5 = scmp.lt.u32.totalorder %s799_s4, %s1242_s1 }
  0x15   : > { %p1035_p11 = pnand %p730_p9, %p1006_p1 }
  0x17   : > { %p801_p13 = pneg %p1035_p11 }
  0x19   : > { %p802_p0 = pnand %p801_p13, %p800_p12 }
  0x1b   : > { %p803_p3 = pneg %p802_p0 }
  0x1d   : > { %p808_p7 = pnand %p806_p5, %p803_p3 }
  0x1f   : > { %811 = shalt.err (!%p808_p7)
}
  0x20   : > { %s812_s9 = scalar_lea.vmem %s148_s26, 2048  ;;  %p820_p1 = scmp.lt.s32.totalorder %s148_s26, %s148_s26 }
  0x21   : > { %p813_p9 = scmp.ne.s32.totalorder %s148_s26, %s812_s9  ;;  %p821_p4 = scmp.lt.s32.totalorder %s812_s9, %s812_s9 }
  0x23   : > { %p815_p10 = pnand %p813_p9, %p801_p13  ;;  %p822_p8 = por %p821_p4, %p820_p1 }
  0x25   : > { %p816_p6 = pneg %p815_p10 }
  0x27   : > { %p823_p2 = pnand %p822_p8, %p816_p6 }
  0x29   : > { %826 = shalt.err (!%p823_p2)
}
  0x2a   : > { %s946_s10 = smov 128   ;;  %s947_s11 = smov 8  }
  0x2b   : > { %733 = dma.hbm_to_vmem [thread:$0]  (!%p1035_p11), %s1242_s1, 2048, %s148_s26, [#allocation6], %s946_s10, %s946_s10, %s947_s11  }
  0x2c   : > { %p34_p1 = scmp.ge.s32.totalorder %s32_s28, 2  ;;  %s41_s25 = sadd.s32 1, %s931_s14 }
  0x2d   : > { %p48_p2 = scmp.ne.s32.totalorder %s931_s14, %s927_s13  ;;  %p49_p4 = scmp.eq.s32.totalorder %s943_s17, 0 }
  0x2e   : > { %s1270_s28 = smov (%p34_p1, %s32_s28), 0  ;;  %p1256_p8 = scmp.ne.s32.totalorder %s1250_s21, 0 }
  0x2f   : > { %p1065_p6 = por %p49_p4, %p48_p2  ;;  %s36_s30 = ssub.s32 %s939_s16, %s1270_s28 }
  0x30   : > { %p1071_p10 = por %p1256_p8, %p48_p2  ;;  %p743_p12 = scmp.lt.s32.totalorder %s943_s17, 2 }
  0x31   : > { %p39_p11 = scmp.eq.s32.totalorder %s36_s30, 0  ;;  %s164_s26 = sand.u32 1, %s931_s14  }
  0x32   : > { %s571_s4 = sshll.u32 %s164_s26, 7  ;;  %s584_s6 = sshll.u32 %s939_s16, 11 }
  0x33   : > { %s1080_s5 = scalar_select %p39_p11, %s931_s14, %s41_s25  }
  0x34   : > { %s1086_s9 = scalar_lea.hbm %s1241_s0, %s584_s6  ;;  %s168_s21 = scalar_lea.vmem [#allocation2], %s571_s4 }
  0x35   : > { %s177_s18 = sshll.u32 %s168_s21, 4  ;;  %p1092_p13 = pnand %p743_p12, %p1065_p6  ;;  %s1088_s18 = int_to_ptr.vmem [resolvable:$true] %s177_s18 }
  0x36   : > { %s1096_s25 = scalar_lea.sflag [#allocation3], %s164_s26  ;;  %s827_s30 = scalar_lea.hbm %s1086_s9, 2048 }
  0x37   : > { %p828_p0 = scmp.ne.s32.totalorder %s1086_s9, %s827_s30  ;;  %p829_p3 = pneg %p1092_p13 }
  0x38   : > { %s832_s29 = scalar_lea.hbm %s1241_s0, 4096  ;;  %p833_p9 = scmp.lt.u32.totalorder %s1086_s9, %s1241_s0 }
  0x39   : > { %p830_p5 = pnand %p829_p3, %p828_p0  ;;  %p834_p1 = scmp.lt.u32.totalorder %s832_s29, %s827_s30 }
  0x3a   : > { %p836_p4 = scmp.lt.u32.totalorder %s827_s30, %s1086_s9 }
  0x3b   : > { %p831_p7 = pneg %p830_p5  ;;  %p835_p2 = por %p834_p1, %p833_p9 }
  0x3d   : > { %p837_p6 = por %p836_p4, %p835_p2 }
  0x3f   : > { %p838_p8 = pnand %p837_p6, %p831_p7 }
  0x41   : > { %841 = shalt.err (!%p838_p8)
}
  0x42   : > { %s842_s26 = scalar_lea.vmem %s1088_s18, 2048  ;;  %s948_s21 = smov [#allocation2]  }
  0x43   : > { %p843_p12 = scmp.ne.s32.totalorder %s1088_s18, %s842_s26  ;;  %s847_s4 = sshll.u32 %s948_s21, 4  ;;  %s848_s4 = int_to_ptr.vmem [resolvable:$false] %s847_s4 }
  0x44   : > { %s849_s6 = scalar_lea.vmem %s848_s4, 4096  ;;  %p850_p5 = scmp.lt.s32.totalorder %s1088_s18, %s848_s4 }
  0x45   : > { %p845_p11 = pnand %p843_p12, %p829_p3  ;;  %p851_p9 = scmp.lt.s32.totalorder %s849_s6, %s842_s26 }
  0x47   : > { %p846_p0 = pneg %p845_p11  ;;  %p852_p1 = por %p851_p9, %p850_p5 }
  0x49   : > { %p853_p2 = pnand %p852_p1, %p846_p0 }
  0x4b   : > { %856 = shalt.err (!%p853_p2)
}
  0x4c   : > { %737 = dma.hbm_to_vmem [thread:$0]  (!%p1092_p13), %s1086_s9, 2048, %s1088_s18, %s1096_s25, %s946_s10, %s946_s10, %s947_s11  }
  0x4d   : > { %p1259_p3 = scmp.ne.s32.totalorder %s1253_s24, 0 }
  0x4e   : > { %s1130_s30 = sand.u32 (!%p1259_p3), 1, %s927_s13   ;;  %p1260_p7 = scmp.ne.s32.totalorder (!%p1259_p3), %s1251_s22, 0 }
  0x4f   : > { %189 = sbr.rel (%p1259_p3) target bundleno = 544 (0x220), region = 32  ;;  %s575_s29 = sshll.u32 (!%p1259_p3), %s1130_s30, 7 }
  0x50   : > { %s192_s7 = scalar_lea.sflag (!%p1259_p3), [#allocation3], %s1130_s30  ;;  %s1136_s19 = scalar_lea.vmem (!%p1259_p3), [#allocation2], %s575_s29 }
  0x56   : > { %910 = dma.done.wait (%p1260_p7), %s192_s7, 2048  }
  0x57   : > { %912 = vsyncadd (%p1260_p7), %s192_s7, 4294965248  ;;  %p1261_p13 = scmp.ne.s32.totalorder %s1249_s20, 0 }
  0x59   : > { %914 = dma.done.wait (%p1261_p13), [#allocation6], 2048  }
  0x5a   : > { %916 = vsyncadd (%p1261_p13), [#allocation6], 4294965248  ;;  %v239_v0 = vld [vmem:[#allocation5] sm:$0xff]  ;;  %v240_v1 = vld [vmem:[#allocation5 + $0x8] sm:$0xff]  ;;  %s1167_s24 = scalar_lea.vmem [#allocation7], %s575_s29  ;;  %s585_s10 = sshll.u32 %s935_s15, 11 }
  0x5b   : > { %v241_v2 = vld [vmem:[#allocation5 + $0x10] sm:$0xff]  ;;  %v674_v3 = vpack.c.bf16 %v240_v1, %v239_v0  ;;  %v242_v4 = vld [vmem:[#allocation5 + $0x18] sm:$0xff]  ;;  %v243_v6 = vld [vmem:[#allocation5 + $0x20] sm:$0xff]  ;;  %s470_s11 = sshll.u32 %s1167_s24, 4  ;;  %s1189_s25 = scalar_lea.hbm %s1244_s3, %s585_s10  ;;  %s1191_s11 = int_to_ptr.vmem [resolvable:$true] %s470_s11 }
  0x5c   : > { %v678_v5 = vpack.c.bf16 %v242_v4, %v241_v2  ;;  %v244_v7 = vld [vmem:[#allocation5 + $0x28] sm:$0xff]  ;;  %v223_v9 = vld [vmem:[%s1136_s19] sm:$0xff]  ;;  %v245_v10 = vld [vmem:[#allocation5 + $0x30] sm:$0xff]  ;;  %s456_s8 = scalar_lea.sflag [#allocation4], %s1130_s30  ;;  %s857_s26 = scalar_lea.vmem %s1191_s11, 2048 }
  0x5d   : > { %675 = vmatprep.subr.bf16.mxu0 %v674_v3  ;;  %706 = vmatprep.subr.bf16.mxu1 %v674_v3  ;;  %v682_v8 = vpack.c.bf16 %v244_v7, %v243_v6  ;;  %v246_v11 = vld [vmem:[#allocation5 + $0x38] sm:$0xff]  ;;  %v231_v12 = vld [vmem:[%s1136_s19 + $0x40] sm:$0xff]  ;;  %v248_v15 = vld [vmem:[#allocation5 + $0x48] sm:$0xff]  ;;  %p858_p4 = scmp.ne.s32.totalorder %s1191_s11, %s857_s26  ;;  %s949_s15 = smov [#allocation7]  }
  0x5e   : > { %677 = vmatpush3.bf16.msra.mxu0 %v674_v3  ;;  %714 = vmatpush3.bf16.msra.mxu1 %v674_v3  ;;  %v686_v13 = vpack.c.bf16 %v246_v11, %v245_v10  ;;  %v247_v14 = vld [vmem:[#allocation5 + $0x40] sm:$0xff]  ;;  %v249_v17 = vld [vmem:[#allocation5 + $0x50] sm:$0xff]  ;;  %v250_v18 = vld [vmem:[#allocation5 + $0x58] sm:$0xff]  ;;  %s861_s21 = sshll.u32 %s949_s15, 4  ;;  %s862_s21 = int_to_ptr.vmem [resolvable:$false] %s861_s21 }
  0x5f   : > { %679 = vmatprep.subr.bf16.mxu0 %v678_v5  ;;  %707 = vmatprep.subr.bf16.mxu1 %v678_v5  ;;  %v690_v16 = vpack.c.bf16 %v248_v15, %v247_v14  ;;  %v694_v19 = vpack.c.bf16 %v250_v18, %v249_v17  ;;  %v251_v20 = vld [vmem:[#allocation5 + $0x60] sm:$0xff]  ;;  %v252_v21 = vld [vmem:[#allocation5 + $0x68] sm:$0xff]  ;;  %v253_v23 = vld [vmem:[#allocation5 + $0x70] sm:$0xff]  ;;  %p859_p6 = pnand %p858_p4, %p1071_p10  ;;  %s863_s4 = scalar_lea.vmem %s862_s21, 4096 }
  0x60   : > { %650 = vmatprep.mubr.f32.mxu0 %v223_v9  ;;  %662 = vmatprep.mubr.f32.mxu1 %v231_v12  ;;  %v698_v22 = vpack.c.bf16 %v252_v21, %v251_v20  ;;  %v254_v24 = vld [vmem:[#allocation5 + $0x78] sm:$0xff]  ;;  %v224_v26 = vld [vmem:[%s1136_s19 + $0x8] sm:$0xff]  ;;  %v225_v28 = vld [vmem:[%s1136_s19 + $0x10] sm:$0xff]  ;;  %p864_p12 = scmp.lt.s32.totalorder %s1191_s11, %s862_s21  ;;  %p865_p11 = scmp.lt.s32.totalorder %s863_s4, %s857_s26 }
  0x61   : > { %v702_v25 = vpack.c.bf16 %v254_v24, %v253_v23  ;;  %v232_v27 = vld [vmem:[%s1136_s19 + $0x48] sm:$0xff]  ;;  %v233_v29 = vld [vmem:[%s1136_s19 + $0x50] sm:$0xff]  ;;  %v226_v30 = vld [vmem:[%s1136_s19 + $0x18] sm:$0xff]  ;;  %p860_p8 = pneg %p859_p6 }
  0x62   : > { %681 = vmatpush3.bf16.msra.mxu0 %v678_v5  ;;  %715 = vmatpush3.bf16.msra.mxu1 %v678_v5  ;;  %v234_v31 = vld [vmem:[%s1136_s19 + $0x58] sm:$0xff]  ;;  %v227_v32 = vld [vmem:[%s1136_s19 + $0x20] sm:$0xff]  ;;  %v228_v34 = vld [vmem:[%s1136_s19 + $0x28] sm:$0xff]  ;;  %p866_p0 = por %p865_p11, %p864_p12 }
  0x63   : > { %683 = vmatprep.subr.bf16.mxu0 %v682_v8  ;;  %708 = vmatprep.subr.bf16.mxu1 %v682_v8  ;;  %v235_v33 = vld [vmem:[%s1136_s19 + $0x60] sm:$0xff]  ;;  %v236_v35 = vld [vmem:[%s1136_s19 + $0x68] sm:$0xff]  ;;  %v229_v36 = vld [vmem:[%s1136_s19 + $0x30] sm:$0xff] }
  0x64   : > { %v237_v37 = vld [vmem:[%s1136_s19 + $0x70] sm:$0xff]  ;;  %v230_v38 = vld [vmem:[%s1136_s19 + $0x38] sm:$0xff]  ;;  %v578_v40 = vld [vmem:[%s1243_s2] ss:$0 sm:$0xff]  ;;  %p867_p5 = pnand %p866_p0, %p860_p8 }
  0x65   : > { %v238_v39 = vld [vmem:[%s1136_s19 + $0x78] sm:$0xff] }
  0x66   : > { %685 = vmatpush3.bf16.msra.mxu0 %v682_v8  ;;  %716 = vmatpush3.bf16.msra.mxu1 %v682_v8 }
  0x67   : > { %687 = vmatprep.subr.bf16.mxu0 %v686_v13  ;;  %709 = vmatprep.subr.bf16.mxu1 %v686_v13 }
  0x6a   : > { %689 = vmatpush3.bf16.msra.mxu0 %v686_v13  ;;  %717 = vmatpush3.bf16.msra.mxu1 %v686_v13 }
  0x6b   : > { %691 = vmatprep.subr.bf16.mxu0 %v690_v16  ;;  %710 = vmatprep.subr.bf16.mxu1 %v690_v16 }
  0x6e   : > { %693 = vmatpush3.bf16.msra.mxu0 %v690_v16  ;;  %718 = vmatpush3.bf16.msra.mxu1 %v690_v16 }
  0x6f   : > { %695 = vmatprep.subr.bf16.mxu0 %v694_v19  ;;  %711 = vmatprep.subr.bf16.mxu1 %v694_v19 }
  0x72   : > { %697 = vmatpush3.bf16.msra.mxu0 %v694_v19  ;;  %719 = vmatpush3.bf16.msra.mxu1 %v694_v19 }
  0x73   : > { %699 = vmatprep.subr.bf16.mxu0 %v698_v22  ;;  %712 = vmatprep.subr.bf16.mxu1 %v698_v22 }
  0x76   : > { %701 = vmatpush3.bf16.msra.mxu0 %v698_v22  ;;  %720 = vmatpush3.bf16.msra.mxu1 %v698_v22 }
  0x77   : > { %703 = vmatprep.subr.bf16.mxu0 %v702_v25  ;;  %713 = vmatprep.subr.bf16.mxu1 %v702_v25 }
  0x7a   : > { %705 = vmatpush3.bf16.msra.mxu0 %v702_v25  ;;  %721 = vmatpush3.bf16.msra.mxu1 %v702_v25 }
  0x7d   : > { %651 = vmatmul.mubr.f32.vlgmr.msra.gmra.mrb[0].mxu0 %v224_v26  ;;  %663 = vmatmul.mubr.f32.vlgmr.msra.gmra.mrb[0].mxu1 %v232_v27 }
  0x7e   : > { %653 = vmatprep.mubr.f32.mxu0 %v225_v28  ;;  %665 = vmatprep.mubr.f32.mxu1 %v233_v29 }
  0x81   : > { %654 = vmatmul.mubr.f32.gmra.mrb[2].mxu0 %v226_v30  ;;  %666 = vmatmul.mubr.f32.gmra.mrb[2].mxu1 %v234_v31 }
  0x82   : > { %656 = vmatprep.mubr.f32.mxu0 %v227_v32  ;;  %668 = vmatprep.mubr.f32.mxu1 %v235_v33 }
  0x85   : > { %657 = vmatmul.mubr.f32.gmra.mrb[4].mxu0 %v228_v34  ;;  %669 = vmatmul.mubr.f32.gmra.mrb[4].mxu1 %v236_v35 }
  0x86   : > { %659 = vmatprep.mubr.f32.mxu0 %v229_v36  ;;  %671 = vmatprep.mubr.f32.mxu1 %v237_v37 }
  0x89   : > { %660 = vmatmul.mubr.f32.gmra.mrb[6].mxu0 %v230_v38  ;;  %672 = vmatmul.mubr.f32.gmra.mrb[6].mxu1 %v238_v39 }
 0x150   : > { %v652_v41 = vpop.f32.mrb[0].mxu0  ;;  %v664_v42 = vpop.f32.mrb[0].mxu1 }
 0x151   : > { %v328_v43 = vpop.f32.mrb[1].mxu0  ;;  %v368_v44 = vpop.f32.mrb[1].mxu1  ;;  %v334_v50 = vadd.f32 %v652_v41, %v578_v40  ;;  %v374_v2 = vadd.f32 %v664_v42, %v578_v40 }
 0x152   : > { %v329_v45 = vadd.f32 %v578_v40, %v328_v43  ;;  %v369_v1 = vadd.f32 %v578_v40, %v368_v44 }
 0x154   : > { %407 = vxpose.xlu0.b32.start [1/16] %v329_v45, 128  ;;  %v655_v46 = vpop.f32.mrb[2].mxu0  ;;  %v667_v47 = vpop.f32.mrb[2].mxu1 }
 0x155   : > { %v338_v48 = vpop.f32.mrb[3].mxu0  ;;  %v378_v49 = vpop.f32.mrb[3].mxu1  ;;  %v344_v60 = vadd.f32 %v655_v46, %v578_v40  ;;  %v384_v4 = vadd.f32 %v667_v47, %v578_v40 }
 0x156   : > { %v339_v51 = vadd.f32 %v578_v40, %v338_v48  ;;  %v379_v3 = vadd.f32 %v578_v40, %v378_v49 }
 0x158   : > { %408 = vxpose.xlu0.b32.cont [2/16] %v334_v50, 128  ;;  %v658_v52 = vpop.f32.mrb[4].mxu0  ;;  %v670_v53 = vpop.f32.mrb[4].mxu1 }
 0x159   : > { %v348_v54 = vpop.f32.mrb[5].mxu0  ;;  %v388_v55 = vpop.f32.mrb[5].mxu1  ;;  %v354_v62 = vadd.f32 %v658_v52, %v578_v40  ;;  %v394_v6 = vadd.f32 %v670_v53, %v578_v40 }
 0x15a   : > { %v349_v61 = vadd.f32 %v578_v40, %v348_v54  ;;  %v389_v5 = vadd.f32 %v578_v40, %v388_v55 }
 0x15c   : > { %409 = vxpose.xlu0.b32.cont [3/16] %v339_v51, 128  ;;  %v661_v56 = vpop.f32.mrb[6].mxu0  ;;  %v673_v57 = vpop.f32.mrb[6].mxu1 }
 0x15d   : > { %v358_v58 = vpop.f32.mrb[7].mxu0  ;;  %v398_v59 = vpop.f32.mrb[7].mxu1  ;;  %v364_v0 = vadd.f32 %v661_v56, %v578_v40  ;;  %v404_v8 = vadd.f32 %v673_v57, %v578_v40 }
 0x15e   : > { %v359_v63 = vadd.f32 %v578_v40, %v358_v58  ;;  %v399_v7 = vadd.f32 %v578_v40, %v398_v59 }
 0x160   : > { %410 = vxpose.xlu0.b32.cont [4/16] %v344_v60, 128 }
 0x164   : > { %411 = vxpose.xlu0.b32.cont [5/16] %v349_v61, 128 }
 0x168   : > { %412 = vxpose.xlu0.b32.cont [6/16] %v354_v62, 128 }
 0x16c   : > { %413 = vxpose.xlu0.b32.cont [7/16] %v359_v63, 128 }
 0x170   : > { %414 = vxpose.xlu0.b32.cont [8/16] %v364_v0, 128 }
 0x174   : > { %415 = vxpose.xlu0.b32.cont [9/16] %v369_v1, 128 }
 0x178   : > { %416 = vxpose.xlu0.b32.cont [10/16] %v374_v2, 128 }
 0x17c   : > { %417 = vxpose.xlu0.b32.cont [11/16] %v379_v3, 128 }
 0x180   : > { %418 = vxpose.xlu0.b32.cont [12/16] %v384_v4, 128 }
 0x184   : > { %419 = vxpose.xlu0.b32.cont [13/16] %v389_v5, 128 }
 0x188   : > { %420 = vxpose.xlu0.b32.cont [14/16] %v394_v6, 128 }
 0x18c   : > { %421 = vxpose.xlu0.b32.cont [15/16] %v399_v7, 128 }
 0x190   : > { %422 = vxpose.xlu0.b32.end [16/16] %v404_v8, 128 }
 0x1d4   : > { %v423_v9 = vpop.trf.xlu0 }
 0x1d5   : > { %439 = vst [vmem:[%s1167_s24] sm:$0xff] %v423_v9 }
 0x1d8   : > { %v424_v10 = vpop.trf.xlu0 }
 0x1d9   : > { %440 = vst [vmem:[%s1167_s24 + $0x8] sm:$0xff] %v424_v10 }
 0x1dc   : > { %v425_v11 = vpop.trf.xlu0 }
 0x1dd   : > { %441 = vst [vmem:[%s1167_s24 + $0x10] sm:$0xff] %v425_v11 }
 0x1e0   : > { %v426_v12 = vpop.trf.xlu0 }
 0x1e1   : > { %442 = vst [vmem:[%s1167_s24 + $0x18] sm:$0xff] %v426_v12 }
 0x1e4   : > { %v427_v13 = vpop.trf.xlu0 }
 0x1e5   : > { %443 = vst [vmem:[%s1167_s24 + $0x20] sm:$0xff] %v427_v13 }
 0x1e8   : > { %v428_v14 = vpop.trf.xlu0 }
 0x1e9   : > { %444 = vst [vmem:[%s1167_s24 + $0x28] sm:$0xff] %v428_v14 }
 0x1ec   : > { %v429_v15 = vpop.trf.xlu0 }
 0x1ed   : > { %445 = vst [vmem:[%s1167_s24 + $0x30] sm:$0xff] %v429_v15 }
 0x1f0   : > { %v430_v16 = vpop.trf.xlu0 }
 0x1f1   : > { %446 = vst [vmem:[%s1167_s24 + $0x38] sm:$0xff] %v430_v16 }
 0x1f4   : > { %v431_v17 = vpop.trf.xlu0 }
 0x1f5   : > { %447 = vst [vmem:[%s1167_s24 + $0x40] sm:$0xff] %v431_v17 }
 0x1f8   : > { %v432_v18 = vpop.trf.xlu0 }
 0x1f9   : > { %448 = vst [vmem:[%s1167_s24 + $0x48] sm:$0xff] %v432_v18 }
 0x1fc   : > { %v433_v19 = vpop.trf.xlu0 }
 0x1fd   : > { %449 = vst [vmem:[%s1167_s24 + $0x50] sm:$0xff] %v433_v19 }
 0x200   : > { %v434_v20 = vpop.trf.xlu0 }
 0x201   : > { %450 = vst [vmem:[%s1167_s24 + $0x58] sm:$0xff] %v434_v20 }
 0x204   : > { %v435_v21 = vpop.trf.xlu0 }
 0x205   : > { %451 = vst [vmem:[%s1167_s24 + $0x60] sm:$0xff] %v435_v21 }
 0x208   : > { %v436_v22 = vpop.trf.xlu0 }
 0x209   : > { %452 = vst [vmem:[%s1167_s24 + $0x68] sm:$0xff] %v436_v22 }
 0x20c   : > { %v437_v23 = vpop.trf.xlu0 }
 0x20d   : > { %453 = vst [vmem:[%s1167_s24 + $0x70] sm:$0xff] %v437_v23 }
 0x210   : > { %v438_v24 = vpop.trf.xlu0 }
 0x211   : > { %454 = vst [vmem:[%s1167_s24 + $0x78] sm:$0xff] %v438_v24 }
 0x212   : > { %870 = shalt.err (!%p867_p5)
}
 0x213   : > { %s871_s6 = scalar_lea.hbm %s1189_s25, 2048  ;;  %s875_s19 = scalar_lea.hbm %s1244_s3, 4096 }
 0x214   : > { %p872_p9 = scmp.ne.s32.totalorder %s1189_s25, %s871_s6  ;;  %p876_p3 = scmp.lt.u32.totalorder %s1189_s25, %s1244_s3 }
 0x215   : > { %p877_p7 = scmp.lt.u32.totalorder %s875_s19, %s871_s6  ;;  %p879_p4 = scmp.lt.u32.totalorder %s871_s6, %s1189_s25 }
 0x216   : > { %p873_p1 = pnand %p872_p9, %p1071_p10 }
 0x217   : > { %p878_p13 = por %p877_p7, %p876_p3 }
 0x218   : > { %p874_p2 = pneg %p873_p1 }
 0x219   : > { %p880_p6 = por %p879_p4, %p878_p13 }
 0x21b   : > { %p881_p8 = pnand %p880_p6, %p874_p2 }
 0x21d   : > { %884 = shalt.err (!%p881_p8)
}
 0x21e   : > { %s950_s24 = smov 128   ;;  %s951_s10 = smov 8  }
 0x21f   : > { %728 = dma.vmem_to_hbm [thread:$0]  (%p1071_p10), %s1191_s11, 2048, %s1189_s25, %s456_s8, %s950_s24, %s950_s24, %s951_s10  }
 0x220 PF: > { %s485_s9 = sand.u32 1, %s923_s12   ;;  %p1262_p12 = scmp.ne.s32.totalorder %s1252_s23, 0 }
 0x221   : > { %p1263_p11 = scmp.ge.s32.totalorder %s943_s17, 2  ;;  %s486_s18 = scalar_lea.sflag [#allocation4], %s485_s9 }
 0x223   : > { %p739_p0 = pnand %p1263_p11, %p1262_p12 }
 0x225   : > { %918 = dma.done.wait (!%p739_p0), %s486_s18, 2048  }
 0x226   : > { %920 = vsyncadd (!%p739_p0), %s486_s18, 4294965248  ;;  %s20_s17 = sadd.s32 1, %s943_s17   ;;  %s1264_s12 = smov %s927_s13 }
 0x227   : > { %p17_p5 = scmp.ge.s32.totalorder %s20_s17, 4   ;;  %s1265_s13 = smov %s931_s14 }
 0x228   : > { %s1266_s14 = smov %s1080_s5  ;;  %s1267_s15 = smov %s939_s16 }
 0x229   : > { %s1268_s16 = smov %s1270_s28  ;;  %19 = sbr.rel (!%p17_p5) target bundleno = 7 (0x7), region = 81 }
 0x230   :  { %491 = vsyncpa [#allocation3], 1 }
 0x231   :  { %493 = vsyncpa [#allocation3 + $0x1], 1 }
 0x232   :  { %494 = vsyncpa [#allocation6], 1 }
 0x233   :  { %495 = vsyncpa [#allocation4], 1 }
 0x234   :  { %497 = vsyncpa [#allocation4 + $0x1], 1 }

</bundles_post_ra>
